<compile_context>
chip_gen: v7x
topology: tpu7x:2x2x1
jax: 0.10.0
libtpu: 0.0.40
codegen_flags: <defaults>
</compile_context>

<pallas_src>
import functools

import jax
import jax.numpy as jnp
from jax.experimental import pallas as pl
from jax.experimental.pallas import tpu as pltpu


def _projector_kernel(x_ref, w1_ref, b1_ref, w2t_ref, b2_ref, *rest, use_mlp):
    # x_ref  : (1, L, T_TILE, D)  VMEM
    # w1_ref : (M, L)  SMEM (f32)       b1_ref : (M,)  SMEM (f32)
    # w2t_ref: (D, H)  VMEM             b2_ref : (1, H) VMEM
    # [w3t_ref: (H, H) VMEM, b3_ref: (1, H) VMEM]   only when use_mlp
    # o_ref  : (1, T_TILE, M*H) VMEM
    if use_mlp:
        w3t_ref, b3_ref, o_ref = rest
    else:
        (o_ref,) = rest

    L = x_ref.shape[1]
    M = w1_ref.shape[0]
    H = w2t_ref.shape[1]

    w2t = w2t_ref[...]
    b2 = b2_ref[...].astype(jnp.float32)
    if use_mlp:
        w3t = w3t_ref[...]
        b3 = b3_ref[...].astype(jnp.float32)

    # M and L are tiny static ints -> fully unrolled.
    for m in range(M):
        # fc1 on the VPU: L broadcast-FMAs over the (T_TILE, D) slab, f32 accum.
        acc = x_ref[0, 0].astype(jnp.float32) * w1_ref[m, 0]
        for l in range(1, L):
            acc = acc + x_ref[0, l].astype(jnp.float32) * w1_ref[m, l]
        y = jnp.maximum(acc + b1_ref[m], 0.0)                     # (T_TILE, D)

        # fc2 (and fc3) on the MXU, batched over the whole token tile.
        z = jnp.dot(y.astype(w2t.dtype), w2t,
                    preferred_element_type=jnp.float32) + b2      # (T_TILE, H)
        if use_mlp:
            z = jnp.maximum(z, 0.0)
            z = jnp.dot(z.astype(w3t.dtype), w3t,
                        preferred_element_type=jnp.float32) + b3

        # Lane-dense store into the flattened (T_TILE, M*H) output slab.
        o_ref[0, :, m * H:(m + 1) * H] = z.astype(o_ref.dtype)


def _token_tiling(T, L, D, itemsize,
                  max_tile=512, x_block_budget=2 * 1024 * 1024):
    """Pick a token tile: big enough to amortize per-grid-step overhead, small
    enough that the double-buffered x block stays well inside the default
    scoped VMEM on v5e / v6e / v7x."""
    cap = max(8, min(max_tile, x_block_budget // max(1, L * D * itemsize)))
    if T <= cap:
        return T, T                     # one tile covers the full token extent
    tile = max(8, (cap // 8) * 8)       # (8,128) rule: sublane multiple of 8
    padded = pl.cdiv(T, tile) * tile
    return tile, padded


def weighted_linear_projector(hidden_states, params, structure="MLP"):
    """hidden_states: (B, num_encoder_layers, num_tokens, encoder_hidden_dim)
    params: (w1 (M,L), b1 (M,), w2 (H,D), b2 (H,), [w3 (H,H), b3 (H,)])
    returns: (B, num_tokens, num_language_layers*2, language_hidden_dim)"""
    use_mlp = (structure == "MLP")
    w1, b1, w2, b2 = params[:4]
    B, L, T, D = hidden_states.shape
    M = w1.shape[0]          # num_language_layers * 2
    H = w2.shape[0]          # language_hidden_dim

    itemsize = jnp.dtype(hidden_states.dtype).itemsize
    tile, Tp = _token_tiling(T, L, D, itemsize)

    x = hidden_states
    if Tp != T:              # pad token axis so it divides evenly into tiles
        x = jnp.pad(x, ((0, 0), (0, 0), (0, Tp - T), (0, 0)))

    # fc1 params as f32 scalars in SMEM; fc2/fc3 weights pre-transposed so the
    # kernel runs plain row-major (rows = tokens) MXU matmuls.
    w1s = w1.astype(jnp.float32)
    b1s = b1.astype(jnp.float32)
    w2t = jnp.transpose(w2)                      # (D, H)
    b2r = b2.reshape(1, H)

    smem = pl.BlockSpec(memory_space=pltpu.MemorySpace.SMEM)
    in_specs = [
        pl.BlockSpec((1, L, tile, D), lambda b, t: (b, 0, t, 0)),   # x
        smem,                                                        # fc1 W
        smem,                                                        # fc1 b
        pl.BlockSpec((D, H), lambda b, t: (0, 0)),                   # fc2 W^T
        pl.BlockSpec((1, H), lambda b, t: (0, 0)),                   # fc2 b
    ]
    args = [x, w1s, b1s, w2t, b2r]
    if use_mlp:
        w3, b3 = params[4], params[5]
        in_specs += [pl.BlockSpec((H, H), lambda b, t: (0, 0)),      # fc3 W^T
                     pl.BlockSpec((1, H), lambda b, t: (0, 0))]      # fc3 b
        args += [jnp.transpose(w3), b3.reshape(1, H)]

    out = pl.pallas_call(
        functools.partial(_projector_kernel, use_mlp=use_mlp),
        out_shape=jax.ShapeDtypeStruct((B, Tp, M * H), hidden_states.dtype),
        grid=(B, Tp // tile),
        in_specs=in_specs,
        out_specs=pl.BlockSpec((1, tile, M * H), lambda b, t: (b, t, 0)),
        compiler_params=pltpu.CompilerParams(
            dimension_semantics=("parallel", "parallel")),
    )(*args)

    if Tp != T:
        out = out[:, :T, :]
    return out.reshape(B, T, M, H)


if __name__ == "__main__":
    class Config:
        num_encoder_layers = 4
        num_language_layers = 3
        encoder_hidden_dim = 32
        language_hidden_dim = 16
        structure = "MLP"

    cfg = Config()
    B, T = 2, 8
    L, M = cfg.num_encoder_layers, cfg.num_language_layers * 2
    D, H = cfg.encoder_hidden_dim, cfg.language_hidden_dim

    key = jax.random.PRNGKey(0)
    kx, k1, k2, k3, k4, k5, k6 = jax.random.split(key, 7)
    x = jax.random.normal(kx, (B, L, T, D), jnp.float32)
    w1 = jax.random.normal(k1, (M, L), jnp.float32) * 0.2
    b1 = jax.random.normal(k2, (M,), jnp.float32) * 0.1
    w2 = jax.random.normal(k3, (H, D), jnp.float32) * 0.2
    b2 = jax.random.normal(k4, (H,), jnp.float32) * 0.1
    w3 = jax.random.normal(k5, (H, H), jnp.float32) * 0.2
    b3 = jax.random.normal(k6, (H,), jnp.float32) * 0.1
    params = (w1, b1, w2, b2, w3, b3)

    # pure-JAX reference mirroring the PyTorch forward
    def reference(xin, structure):
        r = jnp.einsum("bltd,ml->btdm", xin, w1) + b1      # fc1 (over layers)
        r = jnp.transpose(r, (0, 1, 3, 2))                 # (B, T, M, D)
        r = jnp.maximum(r, 0.0)
        r = jnp.einsum("btmd,hd->btmh", r, w2) + b2        # fc2
        if structure == "MLP":
            r = jnp.maximum(r, 0.0)
            r = jnp.einsum("btmh,gh->btmg", r, w3) + b3    # fc3
        return r

    for structure in ("MLP", "Linear"):
        out = jax.block_until_ready(
            weighted_linear_projector(x, params, structure=structure))
        ref = reference(x, structure)
        assert out.shape == (B, T, M, H), out.shape
        assert jnp.allclose(out, ref, atol=2e-4, rtol=2e-4), (
            structure, float(jnp.max(jnp.abs(out - ref))))
    print("KERNEL_OK")
</pallas_src>

<mosaic_0001>
module attributes {stable_mosaic.version = 11 : i64} {
  func.func @_projector_kernel(%arg0: i32, %arg1: i32, %arg2: memref<1x4x8x32xf32, #tpu.memory_space<vmem>>, %arg3: memref<6x4xf32, #tpu.memory_space<smem>>, %arg4: memref<6xf32, #tpu.memory_space<smem>>, %arg5: memref<32x16xf32, #tpu.memory_space<vmem>>, %arg6: memref<1x16xf32, #tpu.memory_space<vmem>>, %arg7: memref<16x16xf32, #tpu.memory_space<vmem>>, %arg8: memref<1x16xf32, #tpu.memory_space<vmem>>, %arg9: memref<1x8x96xf32, #tpu.memory_space<vmem>>) attributes {dimension_semantics = [#tpu.dimension_semantics<parallel>, #tpu.dimension_semantics<parallel>], iteration_bounds = array<i64: 2, 1>, scalar_prefetch = 0 : i64, scratch_operands = 0 : i64, tpu.core_type = #tpu.core_type<tc>, window_params = [{transform_indices = @transform_0, window_bounds = array<i64: 1, 4, 8, 32>}, {transform_indices = @transform_1, window_bounds = array<i64: 6, 4>}, {transform_indices = @transform_2, window_bounds = array<i64: 6>}, {pipeline_mode = #tpu.pipeline_mode<synchronous>, transform_indices = @transform_3, window_bounds = array<i64: 32, 16>}, {pipeline_mode = #tpu.pipeline_mode<synchronous>, transform_indices = @transform_4, window_bounds = array<i64: 1, 16>}, {pipeline_mode = #tpu.pipeline_mode<synchronous>, transform_indices = @transform_5, window_bounds = array<i64: 16, 16>}, {pipeline_mode = #tpu.pipeline_mode<synchronous>, transform_indices = @transform_6, window_bounds = array<i64: 1, 16>}, {transform_indices = @transform_7, window_bounds = array<i64: 1, 8, 96>}]} {
    %c0 = arith.constant 0 : index
    %c0_0 = arith.constant 0 : index
    %0 = vector.load %arg5[%c0, %c0_0] : memref<32x16xf32, #tpu.memory_space<vmem>>, vector<32x16xf32>
    %c0_1 = arith.constant 0 : index
    %c0_2 = arith.constant 0 : index
    %1 = vector.load %arg6[%c0_1, %c0_2] : memref<1x16xf32, #tpu.memory_space<vmem>>, vector<1x16xf32>
    %c0_3 = arith.constant 0 : index
    %c0_4 = arith.constant 0 : index
    %2 = vector.load %arg7[%c0_3, %c0_4] : memref<16x16xf32, #tpu.memory_space<vmem>>, vector<16x16xf32>
    %c0_5 = arith.constant 0 : index
    %c0_6 = arith.constant 0 : index
    %3 = vector.load %arg8[%c0_5, %c0_6] : memref<1x16xf32, #tpu.memory_space<vmem>>, vector<1x16xf32>
    %c0_7 = arith.constant 0 : index
    %c0_8 = arith.constant 0 : index
    %c0_9 = arith.constant 0 : index
    %c0_10 = arith.constant 0 : index
    %4 = vector.load %arg2[%c0_7, %c0_8, %c0_9, %c0_10] : memref<1x4x8x32xf32, #tpu.memory_space<vmem>>, vector<1x1x8x32xf32>
    %5 = vector.shape_cast %4 : vector<1x1x8x32xf32> to vector<8x32xf32>
    %c0_11 = arith.constant 0 : index
    %c0_12 = arith.constant 0 : index
    %6 = memref.load %arg3[%c0_11, %c0_12] : memref<6x4xf32, #tpu.memory_space<smem>>
    %7 = vector.broadcast %6 : f32 to vector<8x32xf32>
    %8 = arith.mulf %5, %7 : vector<8x32xf32>
    %c0_13 = arith.constant 0 : index
    %c1 = arith.constant 1 : index
    %c0_14 = arith.constant 0 : index
    %c0_15 = arith.constant 0 : index
    %9 = vector.load %arg2[%c0_13, %c1, %c0_14, %c0_15] : memref<1x4x8x32xf32, #tpu.memory_space<vmem>>, vector<1x1x8x32xf32>
    %10 = vector.shape_cast %9 : vector<1x1x8x32xf32> to vector<8x32xf32>
    %c0_16 = arith.constant 0 : index
    %c1_17 = arith.constant 1 : index
    %11 = memref.load %arg3[%c0_16, %c1_17] : memref<6x4xf32, #tpu.memory_space<smem>>
    %12 = vector.broadcast %11 : f32 to vector<8x32xf32>
    %13 = arith.mulf %10, %12 : vector<8x32xf32>
    %14 = arith.addf %8, %13 : vector<8x32xf32>
    %c0_18 = arith.constant 0 : index
    %c2 = arith.constant 2 : index
    %c0_19 = arith.constant 0 : index
    %c0_20 = arith.constant 0 : index
    %15 = vector.load %arg2[%c0_18, %c2, %c0_19, %c0_20] : memref<1x4x8x32xf32, #tpu.memory_space<vmem>>, vector<1x1x8x32xf32>
    %16 = vector.shape_cast %15 : vector<1x1x8x32xf32> to vector<8x32xf32>
    %c0_21 = arith.constant 0 : index
    %c2_22 = arith.constant 2 : index
    %17 = memref.load %arg3[%c0_21, %c2_22] : memref<6x4xf32, #tpu.memory_space<smem>>
    %18 = vector.broadcast %17 : f32 to vector<8x32xf32>
    %19 = arith.mulf %16, %18 : vector<8x32xf32>
    %20 = arith.addf %14, %19 : vector<8x32xf32>
    %c0_23 = arith.constant 0 : index
    %c3 = arith.constant 3 : index
    %c0_24 = arith.constant 0 : index
    %c0_25 = arith.constant 0 : index
    %21 = vector.load %arg2[%c0_23, %c3, %c0_24, %c0_25] : memref<1x4x8x32xf32, #tpu.memory_space<vmem>>, vector<1x1x8x32xf32>
    %22 = vector.shape_cast %21 : vector<1x1x8x32xf32> to vector<8x32xf32>
    %c0_26 = arith.constant 0 : index
    %c3_27 = arith.constant 3 : index
    %23 = memref.load %arg3[%c0_26, %c3_27] : memref<6x4xf32, #tpu.memory_space<smem>>
    %24 = vector.broadcast %23 : f32 to vector<8x32xf32>
    %25 = arith.mulf %22, %24 : vector<8x32xf32>
    %26 = arith.addf %20, %25 : vector<8x32xf32>
    %c0_28 = arith.constant 0 : index
    %27 = memref.load %arg4[%c0_28] : memref<6xf32, #tpu.memory_space<smem>>
    %28 = vector.broadcast %27 : f32 to vector<8x32xf32>
    %29 = arith.addf %26, %28 : vector<8x32xf32>
    %cst = arith.constant 0.000000e+00 : f32
    %30 = vector.broadcast %cst : f32 to vector<8x32xf32>
    %31 = arith.maximumf %29, %30 : vector<8x32xf32>
    %cst_29 = arith.constant dense<0.000000e+00> : vector<8x16xf32>
    %32 = tpu.matmul %31, %0, %cst_29 {dimension_numbers = #tpu.dot_dimension_numbers<[1], [0], [0], [1], [0, 0, 1, 1], [], []>} : vector<8x32xf32>, vector<32x16xf32>, vector<8x16xf32> -> vector<8x16xf32>
    %33 = vector.broadcast %1 : vector<1x16xf32> to vector<8x16xf32>
    %34 = arith.addf %32, %33 : vector<8x16xf32>
    %cst_30 = arith.constant 0.000000e+00 : f32
    %35 = vector.broadcast %cst_30 : f32 to vector<8x16xf32>
    %36 = arith.maximumf %34, %35 : vector<8x16xf32>
    %cst_31 = arith.constant dense<0.000000e+00> : vector<8x16xf32>
    %37 = tpu.matmul %36, %2, %cst_31 {dimension_numbers = #tpu.dot_dimension_numbers<[1], [0], [0], [1], [0, 0, 1, 1], [], []>} : vector<8x16xf32>, vector<16x16xf32>, vector<8x16xf32> -> vector<8x16xf32>
    %38 = vector.broadcast %3 : vector<1x16xf32> to vector<8x16xf32>
    %39 = arith.addf %37, %38 : vector<8x16xf32>
    %c0_32 = arith.constant 0 : index
    %c0_33 = arith.constant 0 : index
    %c0_34 = arith.constant 0 : index
    %40 = vector.load %arg9[%c0_32, %c0_33, %c0_34] : memref<1x8x96xf32, #tpu.memory_space<vmem>>, vector<1x8x16xf32>
    %41 = vector.shape_cast %40 : vector<1x8x16xf32> to vector<8x16xf32>
    %42 = vector.shape_cast %39 : vector<8x16xf32> to vector<1x8x16xf32>
    tpu.vector_store %arg9[%c0_32, %c0_33, %c0_34], %42 {strides = array<i32>} : memref<1x8x96xf32, #tpu.memory_space<vmem>>, vector<1x8x16xf32>,
    %c0_35 = arith.constant 0 : index
    %c0_36 = arith.constant 0 : index
    %c0_37 = arith.constant 0 : index
    %c0_38 = arith.constant 0 : index
    %43 = vector.load %arg2[%c0_35, %c0_36, %c0_37, %c0_38] : memref<1x4x8x32xf32, #tpu.memory_space<vmem>>, vector<1x1x8x32xf32>
    %44 = vector.shape_cast %43 : vector<1x1x8x32xf32> to vector<8x32xf32>
    %c1_39 = arith.constant 1 : index
    %c0_40 = arith.constant 0 : index
    %45 = memref.load %arg3[%c1_39, %c0_40] : memref<6x4xf32, #tpu.memory_space<smem>>
    %46 = vector.broadcast %45 : f32 to vector<8x32xf32>
    %47 = arith.mulf %44, %46 : vector<8x32xf32>
    %c0_41 = arith.constant 0 : index
    %c1_42 = arith.constant 1 : index
    %c0_43 = arith.constant 0 : index
    %c0_44 = arith.constant 0 : index
    %48 = vector.load %arg2[%c0_41, %c1_42, %c0_43, %c0_44] : memref<1x4x8x32xf32, #tpu.memory_space<vmem>>, vector<1x1x8x32xf32>
    %49 = vector.shape_cast %48 : vector<1x1x8x32xf32> to vector<8x32xf32>
    %c1_45 = arith.constant 1 : index
    %c1_46 = arith.constant 1 : index
    %50 = memref.load %arg3[%c1_45, %c1_46] : memref<6x4xf32, #tpu.memory_space<smem>>
    %51 = vector.broadcast %50 : f32 to vector<8x32xf32>
    %52 = arith.mulf %49, %51 : vector<8x32xf32>
    %53 = arith.addf %47, %52 : vector<8x32xf32>
    %c0_47 = arith.constant 0 : index
    %c2_48 = arith.constant 2 : index
    %c0_49 = arith.constant 0 : index
    %c0_50 = arith.constant 0 : index
    %54 = vector.load %arg2[%c0_47, %c2_48, %c0_49, %c0_50] : memref<1x4x8x32xf32, #tpu.memory_space<vmem>>, vector<1x1x8x32xf32>
    %55 = vector.shape_cast %54 : vector<1x1x8x32xf32> to vector<8x32xf32>
    %c1_51 = arith.constant 1 : index
    %c2_52 = arith.constant 2 : index
    %56 = memref.load %arg3[%c1_51, %c2_52] : memref<6x4xf32, #tpu.memory_space<smem>>
    %57 = vector.broadcast %56 : f32 to vector<8x32xf32>
    %58 = arith.mulf %55, %57 : vector<8x32xf32>
    %59 = arith.addf %53, %58 : vector<8x32xf32>
    %c0_53 = arith.constant 0 : index
    %c3_54 = arith.constant 3 : index
    %c0_55 = arith.constant 0 : index
    %c0_56 = arith.constant 0 : index
    %60 = vector.load %arg2[%c0_53, %c3_54, %c0_55, %c0_56] : memref<1x4x8x32xf32, #tpu.memory_space<vmem>>, vector<1x1x8x32xf32>
    %61 = vector.shape_cast %60 : vector<1x1x8x32xf32> to vector<8x32xf32>
    %c1_57 = arith.constant 1 : index
    %c3_58 = arith.constant 3 : index
    %62 = memref.load %arg3[%c1_57, %c3_58] : memref<6x4xf32, #tpu.memory_space<smem>>
    %63 = vector.broadcast %62 : f32 to vector<8x32xf32>
    %64 = arith.mulf %61, %63 : vector<8x32xf32>
    %65 = arith.addf %59, %64 : vector<8x32xf32>
    %c1_59 = arith.constant 1 : index
    %66 = memref.load %arg4[%c1_59] : memref<6xf32, #tpu.memory_space<smem>>
    %67 = vector.broadcast %66 : f32 to vector<8x32xf32>
    %68 = arith.addf %65, %67 : vector<8x32xf32>
    %cst_60 = arith.constant 0.000000e+00 : f32
    %69 = vector.broadcast %cst_60 : f32 to vector<8x32xf32>
    %70 = arith.maximumf %68, %69 : vector<8x32xf32>
    %cst_61 = arith.constant dense<0.000000e+00> : vector<8x16xf32>
    %71 = tpu.matmul %70, %0, %cst_61 {dimension_numbers = #tpu.dot_dimension_numbers<[1], [0], [0], [1], [0, 0, 1, 1], [], []>} : vector<8x32xf32>, vector<32x16xf32>, vector<8x16xf32> -> vector<8x16xf32>
    %72 = vector.broadcast %1 : vector<1x16xf32> to vector<8x16xf32>
    %73 = arith.addf %71, %72 : vector<8x16xf32>
    %cst_62 = arith.constant 0.000000e+00 : f32
    %74 = vector.broadcast %cst_62 : f32 to vector<8x16xf32>
    %75 = arith.maximumf %73, %74 : vector<8x16xf32>
    %cst_63 = arith.constant dense<0.000000e+00> : vector<8x16xf32>
    %76 = tpu.matmul %75, %2, %cst_63 {dimension_numbers = #tpu.dot_dimension_numbers<[1], [0], [0], [1], [0, 0, 1, 1], [], []>} : vector<8x16xf32>, vector<16x16xf32>, vector<8x16xf32> -> vector<8x16xf32>
    %77 = vector.broadcast %3 : vector<1x16xf32> to vector<8x16xf32>
    %78 = arith.addf %76, %77 : vector<8x16xf32>
    %c0_64 = arith.constant 0 : index
    %c0_65 = arith.constant 0 : index
    %c16 = arith.constant 16 : index
    %79 = vector.load %arg9[%c0_64, %c0_65, %c16] : memref<1x8x96xf32, #tpu.memory_space<vmem>>, vector<1x8x16xf32>
    %80 = vector.shape_cast %79 : vector<1x8x16xf32> to vector<8x16xf32>
    %81 = vector.shape_cast %78 : vector<8x16xf32> to vector<1x8x16xf32>
    tpu.vector_store %arg9[%c0_64, %c0_65, %c16], %81 {strides = array<i32>} : memref<1x8x96xf32, #tpu.memory_space<vmem>>, vector<1x8x16xf32>,
    %c0_66 = arith.constant 0 : index
    %c0_67 = arith.constant 0 : index
    %c0_68 = arith.constant 0 : index
    %c0_69 = arith.constant 0 : index
    %82 = vector.load %arg2[%c0_66, %c0_67, %c0_68, %c0_69] : memref<1x4x8x32xf32, #tpu.memory_space<vmem>>, vector<1x1x8x32xf32>
    %83 = vector.shape_cast %82 : vector<1x1x8x32xf32> to vector<8x32xf32>
    %c2_70 = arith.constant 2 : index
    %c0_71 = arith.constant 0 : index
    %84 = memref.load %arg3[%c2_70, %c0_71] : memref<6x4xf32, #tpu.memory_space<smem>>
    %85 = vector.broadcast %84 : f32 to vector<8x32xf32>
    %86 = arith.mulf %83, %85 : vector<8x32xf32>
    %c0_72 = arith.constant 0 : index
    %c1_73 = arith.constant 1 : index
    %c0_74 = arith.constant 0 : index
    %c0_75 = arith.constant 0 : index
    %87 = vector.load %arg2[%c0_72, %c1_73, %c0_74, %c0_75] : memref<1x4x8x32xf32, #tpu.memory_space<vmem>>, vector<1x1x8x32xf32>
    %88 = vector.shape_cast %87 : vector<1x1x8x32xf32> to vector<8x32xf32>
    %c2_76 = arith.constant 2 : index
    %c1_77 = arith.constant 1 : index
    %89 = memref.load %arg3[%c2_76, %c1_77] : memref<6x4xf32, #tpu.memory_space<smem>>
    %90 = vector.broadcast %89 : f32 to vector<8x32xf32>
    %91 = arith.mulf %88, %90 : vector<8x32xf32>
    %92 = arith.addf %86, %91 : vector<8x32xf32>
    %c0_78 = arith.constant 0 : index
    %c2_79 = arith.constant 2 : index
    %c0_80 = arith.constant 0 : index
    %c0_81 = arith.constant 0 : index
    %93 = vector.load %arg2[%c0_78, %c2_79, %c0_80, %c0_81] : memref<1x4x8x32xf32, #tpu.memory_space<vmem>>, vector<1x1x8x32xf32>
    %94 = vector.shape_cast %93 : vector<1x1x8x32xf32> to vector<8x32xf32>
    %c2_82 = arith.constant 2 : index
    %c2_83 = arith.constant 2 : index
    %95 = memref.load %arg3[%c2_82, %c2_83] : memref<6x4xf32, #tpu.memory_space<smem>>
    %96 = vector.broadcast %95 : f32 to vector<8x32xf32>
    %97 = arith.mulf %94, %96 : vector<8x32xf32>
    %98 = arith.addf %92, %97 : vector<8x32xf32>
    %c0_84 = arith.constant 0 : index
    %c3_85 = arith.constant 3 : index
    %c0_86 = arith.constant 0 : index
    %c0_87 = arith.constant 0 : index
    %99 = vector.load %arg2[%c0_84, %c3_85, %c0_86, %c0_87] : memref<1x4x8x32xf32, #tpu.memory_space<vmem>>, vector<1x1x8x32xf32>
    %100 = vector.shape_cast %99 : vector<1x1x8x32xf32> to vector<8x32xf32>
    %c2_88 = arith.constant 2 : index
    %c3_89 = arith.constant 3 : index
    %101 = memref.load %arg3[%c2_88, %c3_89] : memref<6x4xf32, #tpu.memory_space<smem>>
    %102 = vector.broadcast %101 : f32 to vector<8x32xf32>
    %103 = arith.mulf %100, %102 : vector<8x32xf32>
    %104 = arith.addf %98, %103 : vector<8x32xf32>
    %c2_90 = arith.constant 2 : index
    %105 = memref.load %arg4[%c2_90] : memref<6xf32, #tpu.memory_space<smem>>
    %106 = vector.broadcast %105 : f32 to vector<8x32xf32>
    %107 = arith.addf %104, %106 : vector<8x32xf32>
    %cst_91 = arith.constant 0.000000e+00 : f32
    %108 = vector.broadcast %cst_91 : f32 to vector<8x32xf32>
    %109 = arith.maximumf %107, %108 : vector<8x32xf32>
    %cst_92 = arith.constant dense<0.000000e+00> : vector<8x16xf32>
    %110 = tpu.matmul %109, %0, %cst_92 {dimension_numbers = #tpu.dot_dimension_numbers<[1], [0], [0], [1], [0, 0, 1, 1], [], []>} : vector<8x32xf32>, vector<32x16xf32>, vector<8x16xf32> -> vector<8x16xf32>
    %111 = vector.broadcast %1 : vector<1x16xf32> to vector<8x16xf32>
    %112 = arith.addf %110, %111 : vector<8x16xf32>
    %cst_93 = arith.constant 0.000000e+00 : f32
    %113 = vector.broadcast %cst_93 : f32 to vector<8x16xf32>
    %114 = arith.maximumf %112, %113 : vector<8x16xf32>
    %cst_94 = arith.constant dense<0.000000e+00> : vector<8x16xf32>
    %115 = tpu.matmul %114, %2, %cst_94 {dimension_numbers = #tpu.dot_dimension_numbers<[1], [0], [0], [1], [0, 0, 1, 1], [], []>} : vector<8x16xf32>, vector<16x16xf32>, vector<8x16xf32> -> vector<8x16xf32>
    %116 = vector.broadcast %3 : vector<1x16xf32> to vector<8x16xf32>
    %117 = arith.addf %115, %116 : vector<8x16xf32>
    %c0_95 = arith.constant 0 : index
    %c0_96 = arith.constant 0 : index
    %c32 = arith.constant 32 : index
    %118 = vector.load %arg9[%c0_95, %c0_96, %c32] : memref<1x8x96xf32, #tpu.memory_space<vmem>>, vector<1x8x16xf32>
    %119 = vector.shape_cast %118 : vector<1x8x16xf32> to vector<8x16xf32>
    %120 = vector.shape_cast %117 : vector<8x16xf32> to vector<1x8x16xf32>
    tpu.vector_store %arg9[%c0_95, %c0_96, %c32], %120 {strides = array<i32>} : memref<1x8x96xf32, #tpu.memory_space<vmem>>, vector<1x8x16xf32>,
    %c0_97 = arith.constant 0 : index
    %c0_98 = arith.constant 0 : index
    %c0_99 = arith.constant 0 : index
    %c0_100 = arith.constant 0 : index
    %121 = vector.load %arg2[%c0_97, %c0_98, %c0_99, %c0_100] : memref<1x4x8x32xf32, #tpu.memory_space<vmem>>, vector<1x1x8x32xf32>
    %122 = vector.shape_cast %121 : vector<1x1x8x32xf32> to vector<8x32xf32>
    %c3_101 = arith.constant 3 : index
    %c0_102 = arith.constant 0 : index
    %123 = memref.load %arg3[%c3_101, %c0_102] : memref<6x4xf32, #tpu.memory_space<smem>>
    %124 = vector.broadcast %123 : f32 to vector<8x32xf32>
    %125 = arith.mulf %122, %124 : vector<8x32xf32>
    %c0_103 = arith.constant 0 : index
    %c1_104 = arith.constant 1 : index
    %c0_105 = arith.constant 0 : index
    %c0_106 = arith.constant 0 : index
    %126 = vector.load %arg2[%c0_103, %c1_104, %c0_105, %c0_106] : memref<1x4x8x32xf32, #tpu.memory_space<vmem>>, vector<1x1x8x32xf32>
    %127 = vector.shape_cast %126 : vector<1x1x8x32xf32> to vector<8x32xf32>
    %c3_107 = arith.constant 3 : index
    %c1_108 = arith.constant 1 : index
    %128 = memref.load %arg3[%c3_107, %c1_108] : memref<6x4xf32, #tpu.memory_space<smem>>
    %129 = vector.broadcast %128 : f32 to vector<8x32xf32>
    %130 = arith.mulf %127, %129 : vector<8x32xf32>
    %131 = arith.addf %125, %130 : vector<8x32xf32>
    %c0_109 = arith.constant 0 : index
    %c2_110 = arith.constant 2 : index
    %c0_111 = arith.constant 0 : index
    %c0_112 = arith.constant 0 : index
    %132 = vector.load %arg2[%c0_109, %c2_110, %c0_111, %c0_112] : memref<1x4x8x32xf32, #tpu.memory_space<vmem>>, vector<1x1x8x32xf32>
    %133 = vector.shape_cast %132 : vector<1x1x8x32xf32> to vector<8x32xf32>
    %c3_113 = arith.constant 3 : index
    %c2_114 = arith.constant 2 : index
    %134 = memref.load %arg3[%c3_113, %c2_114] : memref<6x4xf32, #tpu.memory_space<smem>>
    %135 = vector.broadcast %134 : f32 to vector<8x32xf32>
    %136 = arith.mulf %133, %135 : vector<8x32xf32>
    %137 = arith.addf %131, %136 : vector<8x32xf32>
    %c0_115 = arith.constant 0 : index
    %c3_116 = arith.constant 3 : index
    %c0_117 = arith.constant 0 : index
    %c0_118 = arith.constant 0 : index
    %138 = vector.load %arg2[%c0_115, %c3_116, %c0_117, %c0_118] : memref<1x4x8x32xf32, #tpu.memory_space<vmem>>, vector<1x1x8x32xf32>
    %139 = vector.shape_cast %138 : vector<1x1x8x32xf32> to vector<8x32xf32>
    %c3_119 = arith.constant 3 : index
    %c3_120 = arith.constant 3 : index
    %140 = memref.load %arg3[%c3_119, %c3_120] : memref<6x4xf32, #tpu.memory_space<smem>>
    %141 = vector.broadcast %140 : f32 to vector<8x32xf32>
    %142 = arith.mulf %139, %141 : vector<8x32xf32>
    %143 = arith.addf %137, %142 : vector<8x32xf32>
    %c3_121 = arith.constant 3 : index
    %144 = memref.load %arg4[%c3_121] : memref<6xf32, #tpu.memory_space<smem>>
    %145 = vector.broadcast %144 : f32 to vector<8x32xf32>
    %146 = arith.addf %143, %145 : vector<8x32xf32>
    %cst_122 = arith.constant 0.000000e+00 : f32
    %147 = vector.broadcast %cst_122 : f32 to vector<8x32xf32>
    %148 = arith.maximumf %146, %147 : vector<8x32xf32>
    %cst_123 = arith.constant dense<0.000000e+00> : vector<8x16xf32>
    %149 = tpu.matmul %148, %0, %cst_123 {dimension_numbers = #tpu.dot_dimension_numbers<[1], [0], [0], [1], [0, 0, 1, 1], [], []>} : vector<8x32xf32>, vector<32x16xf32>, vector<8x16xf32> -> vector<8x16xf32>
    %150 = vector.broadcast %1 : vector<1x16xf32> to vector<8x16xf32>
    %151 = arith.addf %149, %150 : vector<8x16xf32>
    %cst_124 = arith.constant 0.000000e+00 : f32
    %152 = vector.broadcast %cst_124 : f32 to vector<8x16xf32>
    %153 = arith.maximumf %151, %152 : vector<8x16xf32>
    %cst_125 = arith.constant dense<0.000000e+00> : vector<8x16xf32>
    %154 = tpu.matmul %153, %2, %cst_125 {dimension_numbers = #tpu.dot_dimension_numbers<[1], [0], [0], [1], [0, 0, 1, 1], [], []>} : vector<8x16xf32>, vector<16x16xf32>, vector<8x16xf32> -> vector<8x16xf32>
    %155 = vector.broadcast %3 : vector<1x16xf32> to vector<8x16xf32>
    %156 = arith.addf %154, %155 : vector<8x16xf32>
    %c0_126 = arith.constant 0 : index
    %c0_127 = arith.constant 0 : index
    %c48 = arith.constant 48 : index
    %157 = vector.load %arg9[%c0_126, %c0_127, %c48] : memref<1x8x96xf32, #tpu.memory_space<vmem>>, vector<1x8x16xf32>
    %158 = vector.shape_cast %157 : vector<1x8x16xf32> to vector<8x16xf32>
    %159 = vector.shape_cast %156 : vector<8x16xf32> to vector<1x8x16xf32>
    tpu.vector_store %arg9[%c0_126, %c0_127, %c48], %159 {strides = array<i32>} : memref<1x8x96xf32, #tpu.memory_space<vmem>>, vector<1x8x16xf32>,
    %c0_128 = arith.constant 0 : index
    %c0_129 = arith.constant 0 : index
    %c0_130 = arith.constant 0 : index
    %c0_131 = arith.constant 0 : index
    %160 = vector.load %arg2[%c0_128, %c0_129, %c0_130, %c0_131] : memref<1x4x8x32xf32, #tpu.memory_space<vmem>>, vector<1x1x8x32xf32>
    %161 = vector.shape_cast %160 : vector<1x1x8x32xf32> to vector<8x32xf32>
    %c4 = arith.constant 4 : index
    %c0_132 = arith.constant 0 : index
    %162 = memref.load %arg3[%c4, %c0_132] : memref<6x4xf32, #tpu.memory_space<smem>>
    %163 = vector.broadcast %162 : f32 to vector<8x32xf32>
    %164 = arith.mulf %161, %163 : vector<8x32xf32>
    %c0_133 = arith.constant 0 : index
    %c1_134 = arith.constant 1 : index
    %c0_135 = arith.constant 0 : index
    %c0_136 = arith.constant 0 : index
    %165 = vector.load %arg2[%c0_133, %c1_134, %c0_135, %c0_136] : memref<1x4x8x32xf32, #tpu.memory_space<vmem>>, vector<1x1x8x32xf32>
    %166 = vector.shape_cast %165 : vector<1x1x8x32xf32> to vector<8x32xf32>
    %c4_137 = arith.constant 4 : index
    %c1_138 = arith.constant 1 : index
    %167 = memref.load %arg3[%c4_137, %c1_138] : memref<6x4xf32, #tpu.memory_space<smem>>
    %168 = vector.broadcast %167 : f32 to vector<8x32xf32>
    %169 = arith.mulf %166, %168 : vector<8x32xf32>
    %170 = arith.addf %164, %169 : vector<8x32xf32>
    %c0_139 = arith.constant 0 : index
    %c2_140 = arith.constant 2 : index
    %c0_141 = arith.constant 0 : index
    %c0_142 = arith.constant 0 : index
    %171 = vector.load %arg2[%c0_139, %c2_140, %c0_141, %c0_142] : memref<1x4x8x32xf32, #tpu.memory_space<vmem>>, vector<1x1x8x32xf32>
    %172 = vector.shape_cast %171 : vector<1x1x8x32xf32> to vector<8x32xf32>
    %c4_143 = arith.constant 4 : index
    %c2_144 = arith.constant 2 : index
    %173 = memref.load %arg3[%c4_143, %c2_144] : memref<6x4xf32, #tpu.memory_space<smem>>
    %174 = vector.broadcast %173 : f32 to vector<8x32xf32>
    %175 = arith.mulf %172, %174 : vector<8x32xf32>
    %176 = arith.addf %170, %175 : vector<8x32xf32>
    %c0_145 = arith.constant 0 : index
    %c3_146 = arith.constant 3 : index
    %c0_147 = arith.constant 0 : index
    %c0_148 = arith.constant 0 : index
    %177 = vector.load %arg2[%c0_145, %c3_146, %c0_147, %c0_148] : memref<1x4x8x32xf32, #tpu.memory_space<vmem>>, vector<1x1x8x32xf32>
    %178 = vector.shape_cast %177 : vector<1x1x8x32xf32> to vector<8x32xf32>
    %c4_149 = arith.constant 4 : index
    %c3_150 = arith.constant 3 : index
    %179 = memref.load %arg3[%c4_149, %c3_150] : memref<6x4xf32, #tpu.memory_space<smem>>
    %180 = vector.broadcast %179 : f32 to vector<8x32xf32>
    %181 = arith.mulf %178, %180 : vector<8x32xf32>
    %182 = arith.addf %176, %181 : vector<8x32xf32>
    %c4_151 = arith.constant 4 : index
    %183 = memref.load %arg4[%c4_151] : memref<6xf32, #tpu.memory_space<smem>>
    %184 = vector.broadcast %183 : f32 to vector<8x32xf32>
    %185 = arith.addf %182, %184 : vector<8x32xf32>
    %cst_152 = arith.constant 0.000000e+00 : f32
    %186 = vector.broadcast %cst_152 : f32 to vector<8x32xf32>
    %187 = arith.maximumf %185, %186 : vector<8x32xf32>
    %cst_153 = arith.constant dense<0.000000e+00> : vector<8x16xf32>
    %188 = tpu.matmul %187, %0, %cst_153 {dimension_numbers = #tpu.dot_dimension_numbers<[1], [0], [0], [1], [0, 0, 1, 1], [], []>} : vector<8x32xf32>, vector<32x16xf32>, vector<8x16xf32> -> vector<8x16xf32>
    %189 = vector.broadcast %1 : vector<1x16xf32> to vector<8x16xf32>
    %190 = arith.addf %188, %189 : vector<8x16xf32>
    %cst_154 = arith.constant 0.000000e+00 : f32
    %191 = vector.broadcast %cst_154 : f32 to vector<8x16xf32>
    %192 = arith.maximumf %190, %191 : vector<8x16xf32>
    %cst_155 = arith.constant dense<0.000000e+00> : vector<8x16xf32>
    %193 = tpu.matmul %192, %2, %cst_155 {dimension_numbers = #tpu.dot_dimension_numbers<[1], [0], [0], [1], [0, 0, 1, 1], [], []>} : vector<8x16xf32>, vector<16x16xf32>, vector<8x16xf32> -> vector<8x16xf32>
    %194 = vector.broadcast %3 : vector<1x16xf32> to vector<8x16xf32>
    %195 = arith.addf %193, %194 : vector<8x16xf32>
    %c0_156 = arith.constant 0 : index
    %c0_157 = arith.constant 0 : index
    %c64 = arith.constant 64 : index
    %196 = vector.load %arg9[%c0_156, %c0_157, %c64] : memref<1x8x96xf32, #tpu.memory_space<vmem>>, vector<1x8x16xf32>
    %197 = vector.shape_cast %196 : vector<1x8x16xf32> to vector<8x16xf32>
    %198 = vector.shape_cast %195 : vector<8x16xf32> to vector<1x8x16xf32>
    tpu.vector_store %arg9[%c0_156, %c0_157, %c64], %198 {strides = array<i32>} : memref<1x8x96xf32, #tpu.memory_space<vmem>>, vector<1x8x16xf32>,
    %c0_158 = arith.constant 0 : index
    %c0_159 = arith.constant 0 : index
    %c0_160 = arith.constant 0 : index
    %c0_161 = arith.constant 0 : index
    %199 = vector.load %arg2[%c0_158, %c0_159, %c0_160, %c0_161] : memref<1x4x8x32xf32, #tpu.memory_space<vmem>>, vector<1x1x8x32xf32>
    %200 = vector.shape_cast %199 : vector<1x1x8x32xf32> to vector<8x32xf32>
    %c5 = arith.constant 5 : index
    %c0_162 = arith.constant 0 : index
    %201 = memref.load %arg3[%c5, %c0_162] : memref<6x4xf32, #tpu.memory_space<smem>>
    %202 = vector.broadcast %201 : f32 to vector<8x32xf32>
    %203 = arith.mulf %200, %202 : vector<8x32xf32>
    %c0_163 = arith.constant 0 : index
    %c1_164 = arith.constant 1 : index
    %c0_165 = arith.constant 0 : index
    %c0_166 = arith.constant 0 : index
    %204 = vector.load %arg2[%c0_163, %c1_164, %c0_165, %c0_166] : memref<1x4x8x32xf32, #tpu.memory_space<vmem>>, vector<1x1x8x32xf32>
    %205 = vector.shape_cast %204 : vector<1x1x8x32xf32> to vector<8x32xf32>
    %c5_167 = arith.constant 5 : index
    %c1_168 = arith.constant 1 : index
    %206 = memref.load %arg3[%c5_167, %c1_168] : memref<6x4xf32, #tpu.memory_space<smem>>
    %207 = vector.broadcast %206 : f32 to vector<8x32xf32>
    %208 = arith.mulf %205, %207 : vector<8x32xf32>
    %209 = arith.addf %203, %208 : vector<8x32xf32>
    %c0_169 = arith.constant 0 : index
    %c2_170 = arith.constant 2 : index
    %c0_171 = arith.constant 0 : index
    %c0_172 = arith.constant 0 : index
    %210 = vector.load %arg2[%c0_169, %c2_170, %c0_171, %c0_172] : memref<1x4x8x32xf32, #tpu.memory_space<vmem>>, vector<1x1x8x32xf32>
    %211 = vector.shape_cast %210 : vector<1x1x8x32xf32> to vector<8x32xf32>
    %c5_173 = arith.constant 5 : index
    %c2_174 = arith.constant 2 : index
    %212 = memref.load %arg3[%c5_173, %c2_174] : memref<6x4xf32, #tpu.memory_space<smem>>
    %213 = vector.broadcast %212 : f32 to vector<8x32xf32>
    %214 = arith.mulf %211, %213 : vector<8x32xf32>
    %215 = arith.addf %209, %214 : vector<8x32xf32>
    %c0_175 = arith.constant 0 : index
    %c3_176 = arith.constant 3 : index
    %c0_177 = arith.constant 0 : index
    %c0_178 = arith.constant 0 : index
    %216 = vector.load %arg2[%c0_175, %c3_176, %c0_177, %c0_178] : memref<1x4x8x32xf32, #tpu.memory_space<vmem>>, vector<1x1x8x32xf32>
    %217 = vector.shape_cast %216 : vector<1x1x8x32xf32> to vector<8x32xf32>
    %c5_179 = arith.constant 5 : index
    %c3_180 = arith.constant 3 : index
    %218 = memref.load %arg3[%c5_179, %c3_180] : memref<6x4xf32, #tpu.memory_space<smem>>
    %219 = vector.broadcast %218 : f32 to vector<8x32xf32>
    %220 = arith.mulf %217, %219 : vector<8x32xf32>
    %221 = arith.addf %215, %220 : vector<8x32xf32>
    %c5_181 = arith.constant 5 : index
    %222 = memref.load %arg4[%c5_181] : memref<6xf32, #tpu.memory_space<smem>>
    %223 = vector.broadcast %222 : f32 to vector<8x32xf32>
    %224 = arith.addf %221, %223 : vector<8x32xf32>
    %cst_182 = arith.constant 0.000000e+00 : f32
    %225 = vector.broadcast %cst_182 : f32 to vector<8x32xf32>
    %226 = arith.maximumf %224, %225 : vector<8x32xf32>
    %cst_183 = arith.constant dense<0.000000e+00> : vector<8x16xf32>
    %227 = tpu.matmul %226, %0, %cst_183 {dimension_numbers = #tpu.dot_dimension_numbers<[1], [0], [0], [1], [0, 0, 1, 1], [], []>} : vector<8x32xf32>, vector<32x16xf32>, vector<8x16xf32> -> vector<8x16xf32>
    %228 = vector.broadcast %1 : vector<1x16xf32> to vector<8x16xf32>
    %229 = arith.addf %227, %228 : vector<8x16xf32>
    %cst_184 = arith.constant 0.000000e+00 : f32
    %230 = vector.broadcast %cst_184 : f32 to vector<8x16xf32>
    %231 = arith.maximumf %229, %230 : vector<8x16xf32>
    %cst_185 = arith.constant dense<0.000000e+00> : vector<8x16xf32>
    %232 = tpu.matmul %231, %2, %cst_185 {dimension_numbers = #tpu.dot_dimension_numbers<[1], [0], [0], [1], [0, 0, 1, 1], [], []>} : vector<8x16xf32>, vector<16x16xf32>, vector<8x16xf32> -> vector<8x16xf32>
    %233 = vector.broadcast %3 : vector<1x16xf32> to vector<8x16xf32>
    %234 = arith.addf %232, %233 : vector<8x16xf32>
    %c0_186 = arith.constant 0 : index
    %c0_187 = arith.constant 0 : index
    %c80 = arith.constant 80 : index
    %235 = vector.load %arg9[%c0_186, %c0_187, %c80] : memref<1x8x96xf32, #tpu.memory_space<vmem>>, vector<1x8x16xf32>
    %236 = vector.shape_cast %235 : vector<1x8x16xf32> to vector<8x16xf32>
    %237 = vector.shape_cast %234 : vector<8x16xf32> to vector<1x8x16xf32>
    tpu.vector_store %arg9[%c0_186, %c0_187, %c80], %237 {strides = array<i32>} : memref<1x8x96xf32, #tpu.memory_space<vmem>>, vector<1x8x16xf32>,
    return
  }
  func.func @transform_0(%arg0: i32, %arg1: i32) -> (i32, i32, i32, i32) {
    %c0_i32 = arith.constant 0 : i32
    %c0_i32_0 = arith.constant 0 : i32
    %c0_i32_1 = arith.constant 0 : i32
    return %arg0, %c0_i32, %arg1, %c0_i32_0 : i32, i32, i32, i32
  }
  func.func @transform_1(%arg0: i32, %arg1: i32) -> (i32, i32) {
    %c0_i32 = arith.constant 0 : i32
    %c0_i32_0 = arith.constant 0 : i32
    %c0_i32_1 = arith.constant 0 : i32
    return %c0_i32, %c0_i32_0 : i32, i32
  }
  func.func @transform_2(%arg0: i32, %arg1: i32) -> i32 {
    %c0_i32 = arith.constant 0 : i32
    %c0_i32_0 = arith.constant 0 : i32
    return %c0_i32 : i32
  }
  func.func @transform_3(%arg0: i32, %arg1: i32) -> (i32, i32) {
    %c0_i32 = arith.constant 0 : i32
    %c0_i32_0 = arith.constant 0 : i32
    %c0_i32_1 = arith.constant 0 : i32
    return %c0_i32, %c0_i32_0 : i32, i32
  }
  func.func @transform_4(%arg0: i32, %arg1: i32) -> (i32, i32) {
    %c0_i32 = arith.constant 0 : i32
    %c0_i32_0 = arith.constant 0 : i32
    %c0_i32_1 = arith.constant 0 : i32
    return %c0_i32, %c0_i32_0 : i32, i32
  }
  func.func @transform_5(%arg0: i32, %arg1: i32) -> (i32, i32) {
    %c0_i32 = arith.constant 0 : i32
    %c0_i32_0 = arith.constant 0 : i32
    %c0_i32_1 = arith.constant 0 : i32
    return %c0_i32, %c0_i32_0 : i32, i32
  }
  func.func @transform_6(%arg0: i32, %arg1: i32) -> (i32, i32) {
    %c0_i32 = arith.constant 0 : i32
    %c0_i32_0 = arith.constant 0 : i32
    %c0_i32_1 = arith.constant 0 : i32
    return %c0_i32, %c0_i32_0 : i32, i32
  }
  func.func @transform_7(%arg0: i32, %arg1: i32) -> (i32, i32, i32) {
    %c0_i32 = arith.constant 0 : i32
    %c0_i32_0 = arith.constant 0 : i32
    return %arg0, %arg1, %c0_i32 : i32, i32, i32
  }
}

</mosaic_0001>

<bundles_post_ra>
// kernel: tpu_custom_call.1
= control target key start
LH: loop header
LB: loop body
LE: loop exit
PB: predicated region body
PF: predicated region fallthrough
CT: control target
= control target key end

     0   :  { %s2503_s0 = inlined_call_operand.hbm [shape: f32[2,4,8,32], index: 0, kind: input, shape index: {}]   ;;  %s2504_s1 = inlined_call_operand.vmem [shape: f32[6,4], index: 1, kind: input, shape index: {}]   ;;  %s2505_s2 = inlined_call_operand.vmem [shape: f32[6], index: 2, kind: input, shape index: {}]   ;;  %s2506_s3 = inlined_call_operand.vmem [shape: f32[32,16], index: 3, kind: input, shape index: {}]   ;;  %s2507_s4 = inlined_call_operand.vmem [shape: f32[1,16], index: 4, kind: input, shape index: {}]   ;;  %s2508_s5 = inlined_call_operand.vmem [shape: f32[16,16], index: 5, kind: input, shape index: {}]   ;;  %s2509_s6 = inlined_call_operand.vmem [shape: f32[1,16], index: 6, kind: input, shape index: {}]   ;;  %s2510_s7 = inlined_call_operand.hbm [shape: f32[2,8,96], index: 7, kind: output, shape index: {}]  }
   0x1   :  { %2519 = sst [smem:[#allocation15_spill]] %s2504_s1 }
   0x2   :  { %2520 = sst [smem:[#allocation16_spill]] %s2505_s2 }
   0x3   :  { %12 = vsyncpa [#allocation3], 0 }
   0x4   :  { %14 = vsyncpa [#allocation3 + $0x1], 0 }
   0x5   :  { %15 = vsyncpa [#allocation5], 0 }
   0x6   :  { %16 = vsyncpa [#allocation8], 0 }
   0x7   :  { %17 = vsyncpa [#allocation4], 0 }
   0x8   :  { %19 = vsyncpa [#allocation4 + $0x1], 0  ;;  %s2123_s24 = smov 0   ;;  %s2125_s25 = smov 0  }
   0x9   :  { %s2127_s26 = smov 0   ;;  %s2129_s27 = smov 0  }
   0xa   :  { %s2131_s28 = smov 0   ;;  %s2133_s29 = smov 0  }
   0xb LB: > { %2521 = sst [smem:[#allocation14_spill]] %s2067_s29  ;;  %s1535_s30 = sadd.s32 4294967295, %s2067_s29   ;;  %s2067_s29 = sphi %s2133_s29, %s25_s29   ;;  %s2063_s28 = sphi %s2131_s28, %s2544_s28   ;;  %s2059_s27 = sphi %s2129_s27, %s2543_s27   ;;  %s2055_s26 = sphi %s2127_s26, %s2542_s26   ;;  %s2051_s25 = sphi %s2125_s25, %s2541_s25   ;;  %s2047_s24 = sphi %s2123_s24, %s2540_s24  }
   0xc   : > { %s1536_s8 = sadd.s32 4294967294, %s2067_s29   ;;  %s46_s9 = sadd.s32 1, %s2055_s26 }
   0xd   : > { %p53_p0 = scmp.ne.s32.totalorder %s2055_s26, %s2051_s25  ;;  %p54_p1 = scmp.eq.s32.totalorder %s2067_s29, 0 }
   0xe   : > { %p59_p2 = scmp.ne.s32.totalorder %s2051_s25, %s2047_s24  ;;  %p2161_p3 = scmp.eq.s32.totalorder %s1535_s30, 0 }
   0xf   : > { %p211_p4 = scmp.eq.s32.totalorder %s1535_s30, 1  ;;  %p2165_p5 = por %p54_p1, %p53_p0 }
  0x10   : > { %s2522_s10 = scalar_select %p2161_p3, 1, 0 }
  0x11   : > { %p217_p6 = scmp.eq.s32.totalorder %s1536_s8, 1  ;;  %p2171_p7 = por %p2161_p3, %p59_p2 }
  0x12   : > { %p2175_p8 = por %p211_p4, %p53_p0  ;;  %p1537_p10 = scmp.ge.s32.totalorder %s2067_s29, 1 }
  0x13   : > { %s2524_s12 = scalar_select %p2171_p7, 1, 0 }
  0x14   : > { %s2525_s13 = scalar_select %p2175_p8, 1, 0 }
  0x15   : > { %p2179_p9 = por %p217_p6, %p59_p2  ;;  %p224_p11 = scmp.lt.s32.totalorder %s2067_s29, 3 }
  0x16   : > { %s2527_s1 = sld [smem:[#allocation15_spill]]  ;;  %p1853_p0 = scmp.lt.s32.totalorder %s2067_s29, 2 }
  0x17   : > { %s2526_s14 = scalar_select %p2179_p9, 1, 0 }
  0x18   : > { %p2188_p12 = pnand %p1537_p10, %p224_p11  ;;  %s2529_s2 = sld [smem:[#allocation16_spill]] }
  0x19   : > { %p2201_p2 = pnand %p1853_p0, %p2165_p5 }
  0x1a   : > { %s2528_s18 = scalar_select %p2188_p12, 1, 0 }
  0x1b   : > { %p1836_p1 = pneg %p2188_p12 }
  0x1c   : > { %s237_s17 = sshll.u32 %s2527_s1, 4  ;;  %s238_s17 = int_to_ptr.vmem [resolvable:$true] %s237_s17 }
  0x1d   : > { %s2530_s22 = scalar_select %p2201_p2, 1, 0 }
  0x1e   : > { %s248_s21 = sshll.u32 %s2529_s2, 4  ;;  %p2207_p4 = pnand %p1836_p1, %p2161_p3  ;;  %s249_s21 = int_to_ptr.vmem [resolvable:$true] %s248_s21 }
  0x1f   : > { %s1917_s30 = scalar_lea.vmem %s238_s17, 128  ;;  %p1925_p9 = scmp.lt.s32.totalorder %s238_s17, %s238_s17 }
  0x20   : > { %p1918_p6 = scmp.ne.s32.totalorder %s238_s17, %s1917_s30  ;;  %p1919_p10 = pneg %p2207_p4 }
  0x21   : > { %p1926_p8 = scmp.lt.s32.totalorder %s1917_s30, %s1917_s30 }
  0x22   : > { %p1920_p11 = pnand %p1919_p10, %p1918_p6 }
  0x23   : > { %p1927_p7 = por %p1926_p8, %p1925_p9 }
  0x24   : > { %p1921_p13 = pneg %p1920_p11 }
  0x26   : > { %p1928_p5 = pnand %p1927_p7, %p1921_p13 }
  0x28   : > { %1931 = shalt.err (!%p1928_p5)
}
  0x29   : > { %s2069_s8 = smov [#allocation6]   ;;  %s1932_s11 = scalar_lea.vmem %s249_s21, 16 }
  0x2a   : > { %1839 = dma.vmem_to_smem (!%p2207_p4), %s238_s17, 128, %s2069_s8, [#allocation5]  }
  0x2b   : > { %p1933_p0 = scmp.ne.s32.totalorder %s249_s21, %s1932_s11  ;;  %p1940_p12 = scmp.lt.s32.totalorder %s249_s21, %s249_s21 }
  0x2c   : > { %p1941_p2 = scmp.lt.s32.totalorder %s1932_s11, %s1932_s11 }
  0x2d   : > { %p1935_p1 = pnand %p1933_p0, %p1919_p10 }
  0x2e   : > { %p1942_p6 = por %p1941_p2, %p1940_p12 }
  0x2f   : > { %p1936_p3 = pneg %p1935_p1 }
  0x31   : > { %p1943_p11 = pnand %p1942_p6, %p1936_p3 }
  0x33   : > { %1946 = shalt.err (!%p1943_p11)
}
  0x34   : > { %s2070_s15 = smov [#allocation7]   ;;  %s37_s16 = sadd.s32 1, %s2063_s28 }
  0x35   : > { %1842 = dma.vmem_to_smem (!%p2207_p4), %s249_s21, 16, %s2070_s15, [#allocation8]  }
  0x36   : > { %s271_s17 = sand.u32 1, %s2055_s26   ;;  %p39_p7 = scmp.ge.s32.totalorder %s37_s16, 2 }
  0x37   : > { %s1541_s19 = sshll.u32 %s271_s17, 5  ;;  %s1613_s20 = sshll.u32 %s2063_s28, 9 }
  0x38   : > { %s2546_s16 = smov (%p39_p7, %s37_s16), 0  ;;  %s2225_s23 = scalar_lea.hbm %s2503_s0, %s1613_s20 }
  0x39   : > { %s41_s11 = ssub.s32 %s2063_s28, %s2546_s16  ;;  %s275_s21 = scalar_lea.vmem [#allocation2], %s1541_s19 }
  0x3a   : > { %s283_s15 = sshll.u32 %s275_s21, 4  ;;  %p44_p3 = scmp.eq.s32.totalorder %s41_s11, 0  ;;  %s2229_s15 = int_to_ptr.vmem [resolvable:$true] %s283_s15 }
  0x3b   : > { %s2236_s2 = scalar_lea.sflag [#allocation3], %s271_s17  ;;  %s1947_s29 = scalar_lea.hbm %s2225_s23, 512 }
  0x3c   : > { %s2234_s1 = scalar_select %p44_p3, %s2055_s26, %s46_s9  }
  0x3d   : > { %p1948_p8 = scmp.ne.s32.totalorder %s2225_s23, %s1947_s29  ;;  %p2532_p9 = scmp.ne.s32.totalorder %s2530_s22, 0 }
  0x3e   : > { %s1952_s19 = scalar_lea.hbm %s2503_s0, 1024  ;;  %p1953_p4 = scmp.lt.u32.totalorder %s2225_s23, %s2503_s0 }
  0x3f   : > { %p1949_p12 = pneg %p2532_p9  ;;  %p1954_p10 = scmp.lt.u32.totalorder %s1952_s19, %s1947_s29 }
  0x40   : > { %p1956_p0 = scmp.lt.u32.totalorder %s1947_s29, %s2225_s23 }
  0x41   : > { %p1950_p13 = pnand %p1949_p12, %p1948_p8  ;;  %p1955_p5 = por %p1954_p10, %p1953_p4 }
  0x43   : > { %p1951_p2 = pneg %p1950_p13  ;;  %p1957_p1 = por %p1956_p0, %p1955_p5 }
  0x45   : > { %p1958_p6 = pnand %p1957_p1, %p1951_p2 }
  0x47   : > { %1961 = shalt.err (!%p1958_p6)
}
  0x48   : > { %s1962_s9 = scalar_lea.vmem %s2229_s15, 512  ;;  %s2071_s17 = smov [#allocation2]  }
  0x49   : > { %p1963_p11 = scmp.ne.s32.totalorder %s2229_s15, %s1962_s9  ;;  %s1967_s21 = sshll.u32 %s2071_s17, 4  ;;  %s1968_s21 = int_to_ptr.vmem [resolvable:$false] %s1967_s21 }
  0x4a   : > { %s1969_s20 = scalar_lea.vmem %s1968_s21, 1024  ;;  %p1970_p8 = scmp.lt.s32.totalorder %s2229_s15, %s1968_s21 }
  0x4b   : > { %p1965_p7 = pnand %p1963_p11, %p1949_p12  ;;  %p1971_p13 = scmp.lt.s32.totalorder %s1969_s20, %s1962_s9 }
  0x4d   : > { %p1966_p3 = pneg %p1965_p7  ;;  %p1972_p4 = por %p1971_p13, %p1970_p8 }
  0x4f   : > { %p1973_p10 = pnand %p1972_p4, %p1966_p3 }
  0x51   : > { %1976 = shalt.err (!%p1973_p10)
}
  0x52   : > { %s2072_s29 = smov 128   ;;  %s2073_s30 = smov 8  }
  0x53   : > { %1846 = dma.hbm_to_vmem [thread:$0]  (!%p2532_p9), %s2225_s23, 512, %s2229_s15, %s2236_s2, %s2072_s29, %s2072_s29, %s2073_s30  }
  0x54   : > { %p2533_p12 = scmp.ne.s32.totalorder %s2528_s18, 0 }
  0x55   : > { %s2267_s19 = sand.u32 (!%p2533_p12), 1, %s2051_s25   ;;  %p2534_p2 = scmp.ne.s32.totalorder (!%p2533_p12), %s2524_s12, 0 }
  0x56   : > { %295 = sbr.rel (%p2533_p12) target bundleno = 1800 (0x708), region = 48  ;;  %s1545_s8 = sshll.u32 (!%p2533_p12), %s2267_s19, 5 }
  0x57   : > { %s298_s11 = scalar_lea.sflag (!%p2533_p12), [#allocation3], %s2267_s19  ;;  %s2271_s9 = scalar_lea.vmem (!%p2533_p12), [#allocation2], %s1545_s8 }
  0x5d   : > { %2030 = dma.done.wait (%p2534_p2), %s298_s11, 512  }
  0x5e   : > { %2032 = vsyncadd (%p2534_p2), %s298_s11, 4294966784  ;;  %p2535_p9 = scmp.ne.s32.totalorder %s2522_s10, 0 }
  0x60   : > { %2034 = dma.done.wait (%p2535_p9), [#allocation5], 128  }
  0x61   : > { %2036 = vsyncadd (%p2535_p9), [#allocation5], 4294967168 }
  0x62   : > { %2038 = dma.done.wait (%p2535_p9), [#allocation8], 16  }
  0x63   : > { %2040 = vsyncadd (%p2535_p9), [#allocation8], 4294967280 }
  0x64   : > { %314 = sfence }
  0x65   : > { %v341_v0 = vld [vmem:[%s2506_s3] sm:$0xff]  ;;  %v342_v1 = vld [vmem:[%s2506_s3 + $0x8] sm:$0xff]  ;;  %v343_v2 = vld [vmem:[%s2506_s3 + $0x10] sm:$0xff]  ;;  %v2074_v3 = vmov 0.0|0.0   ;;  %vm2075_vm0 = vmmov 0   ;;  %v2076_v6 = vmov 0.0  }
  0x66   : > { %1770 = vmatprep.subr.bf16.mxu0 %v2074_v3  ;;  %v2295_v4 = vpack.c.bf16 %v342_v1, %v341_v0  ;;  %v344_v5 = vld [vmem:[%s2506_s3 + $0x18] sm:$0xff]  ;;  %1670 = vmatprep.mubr.msk.f32.mxu0 %vm2075_vm0, %v2076_v6  ;;  %s350_s21 = sld [smem:[#allocation6]]  ;;  %s1550_s20 = sld [smem:[#allocation6 + $0x1]]  ;;  %v2310_v8 = vld [vmem:[%s2271_s9] sm:$0xff]  ;;  %v2313_v9 = vld [vmem:[%s2271_s9 + $0x8] sm:$0xff]  ;;  %vm381_vm1 = vcmask 261120  }
  0x67   : > { %s1552_s29 = sld [smem:[#allocation6 + $0x2]]  ;;  %1776 = vmatprep.subr.bf16.mxu1 %v2074_v3  ;;  %1677 = vmatprep.mubr.msk.f32.mxu1 %vm2075_vm0, %v2076_v6  ;;  %v2306_v7 = vpack.c.bf16 %v344_v5, %v343_v2  ;;  %s1554_s30 = sld [smem:[#allocation6 + $0x3]]  ;;  %v2316_v10 = vld [vmem:[%s2271_s9 + $0x10] sm:$0xff]  ;;  %v2321_v15 = vld [vmem:[%s2271_s9 + $0x18] sm:$0xff]  ;;  %v346_v26 = vld [vmem:[%s2508_s5] sm:$0xff]  ;;  %vm462_vm2 = vcmask 130048  }
  0x68   : > { %1772 = vmatpush3.bf16.msra.mxu0 %v2295_v4  ;;  %s371_s8 = sld [smem:[#allocation7]]  ;;  %v347_v27 = vld [vmem:[%s2508_s5 + $0x8] sm:$0xff]  ;;  %s1561_s12 = sld [smem:[#allocation6 + $0x81]]  ;;  %v2349_v39 = vld [vmem:[%s2507_s4] ss:$0 sm:$0xff]  ;;  %vm711_vm3 = vcmask 261248  }
  0x69   : > { %1773 = vmatprep.subr.bf16.mxu0 %v2074_v3  ;;  %v2336_v28 = vpack.c.bf16 %v347_v27, %v346_v26  ;;  %s1559_s22 = sld [smem:[#allocation6 + $0x80]]  ;;  %s1563_s23 = sld [smem:[#allocation6 + $0x82]]  ;;  %v2370_v52 = vld [vmem:[%s2509_s6] ss:$0 sm:$0xff]  ;;  %vm887_vm4 = vcmask 392448   ;;  %vm1063_vm5 = vcmask 523648  }
  0x6a   : > { %s1565_s15 = sld [smem:[#allocation6 + $0x83]]  ;;  %s1566_s10 = sld [smem:[#allocation7 + $0x1]]  ;;  %vm1239_vm6 = vcmask 654848   ;;  %vm1415_vm7 = vcmask 786048  }
  0x6b   : > { %1778 = vmatpush3.bf16.msra.mxu1 %v2336_v28  ;;  %s1548_s11 = sshll.u32 %s2267_s19, 3  ;;  %s1576_s18 = sld [smem:[#allocation7 + $0x2]] }
  0x6c   : > { %1775 = vmatpush3.bf16.msra.mxu0 %v2306_v7  ;;  %v351_v11 = vstv %s350_s21  ;;  %v356_v13 = vstv %s1550_s20  ;;  %1779 = vmatprep.subr.bf16.mxu1 %v2074_v3  ;;  %s1569_s20 = sld [smem:[#allocation6 + $0x100]]  ;;  %s1586_s17 = sld [smem:[#allocation7 + $0x3]] }
  0x6d   : > { %v352_v12 = vmul.f32 %v351_v11, %v2310_v8  ;;  %v362_v14 = vstv %s1552_s29  ;;  %1785 = vmatprep.subr.bf16.mxu0 %v2074_v3  ;;  %v357_v16 = vmul.f32 %v2313_v9, %v356_v13  ;;  %v368_v18 = vstv %s1554_s30  ;;  %s1571_s29 = sld [smem:[#allocation6 + $0x101]]  ;;  %s1573_s30 = sld [smem:[#allocation6 + $0x102]] }
  0x6e   : > { %v363_v17 = vmul.f32 %v2316_v10, %v362_v14  ;;  %v369_v20 = vmul.f32 %v2321_v15, %v368_v18  ;;  %v372_v22 = vstv %s371_s8  ;;  %v543_v30 = vstv %s1561_s12  ;;  %s1575_s8 = sld [smem:[#allocation6 + $0x103]]  ;;  %s1579_s12 = sld [smem:[#allocation6 + $0x180]] }
  0x6f   : > { %v358_v19 = vadd.f32 %v357_v16, %v352_v12  ;;  %v539_v29 = vstv %s1559_s22  ;;  %v544_v32 = vmul.f32 %v2313_v9, %v543_v30  ;;  %v548_v33 = vstv %s1563_s23  ;;  %s2374_s22 = scalar_lea.vmem [#allocation9], %s1548_s11  ;;  %s1581_s23 = sld [smem:[#allocation6 + $0x181]] }
  0x70   : > { %v540_v31 = vmul.f32 %v539_v29, %v2310_v8  ;;  %v549_v35 = vmul.f32 %v2316_v10, %v548_v33  ;;  %v553_v36 = vstv %s1565_s15  ;;  %v557_v44 = vstv %s1566_s10  ;;  %s1583_s15 = sld [smem:[#allocation6 + $0x182]]  ;;  %s1585_s10 = sld [smem:[#allocation6 + $0x183]] }
  0x71   : > { %v364_v21 = vadd.f32 %v363_v17, %v358_v19  ;;  %v554_v38 = vmul.f32 %v2321_v15, %v553_v36  ;;  %v733_v2 = vstv %s1576_s18  ;;  %s2077_s21 = smov 16   ;;  %s1596_s11 = sld [smem:[#allocation7 + $0x4]] }
  0x72   : > { %v545_v34 = vadd.f32 %v544_v32, %v540_v31  ;;  %v715_v48 = vstv %s1569_s20  ;;  %v909_v32 = vstv %s1586_s17  ;;  %s1589_s20 = sld [smem:[#allocation6 + $0x200]]  ;;  %s2078_s9 = smov 32  }
  0x73   : > { %v370_v23 = vadd.f32 %v369_v20, %v364_v21  ;;  %v719_v49 = vstv %s1571_s29  ;;  %v716_v50 = vmul.f32 %v715_v48, %v2310_v8  ;;  %v724_v53 = vstv %s1573_s30  ;;  %s1591_s29 = sld [smem:[#allocation6 + $0x201]]  ;;  %s1593_s30 = sld [smem:[#allocation6 + $0x202]] }
  0x74   : > { %v550_v37 = vadd.f32 %v549_v35, %v545_v34  ;;  %v720_v51 = vmul.f32 %v2313_v9, %v719_v49  ;;  %v725_v58 = vmul.f32 %v2316_v10, %v724_v53  ;;  %v729_v59 = vstv %s1575_s8  ;;  %s1595_s8 = sld [smem:[#allocation6 + $0x203]]  ;;  %s1599_s2 = sld [smem:[#allocation6 + $0x280]] }
  0x75   : > { %v373_v24 = vadd.f32 %v372_v22, %v370_v23  ;;  %v730_v61 = vmul.f32 %v2321_v15, %v729_v59  ;;  %v891_v13 = vstv %s1579_s12  ;;  %v895_v14 = vstv %s1581_s23  ;;  %s1601_s18 = sld [smem:[#allocation6 + $0x281]]  ;;  %s1603_s12 = sld [smem:[#allocation6 + $0x282]] }
  0x76   : > { %v555_v43 = vadd.f32 %v554_v38, %v550_v37  ;;  %v721_v57 = vadd.f32 %v720_v51, %v716_v50  ;;  %v892_v16 = vmul.f32 %v891_v13, %v2310_v8  ;;  %v896_v17 = vmul.f32 %v2313_v9, %v895_v14  ;;  %s1605_s23 = sld [smem:[#allocation6 + $0x283]]  ;;  %s2080_s17 = smov 64  }
  0x77   : > { %v374_v25 = vmax.f32 %v373_v24, 0.0  ;;  %v900_v18 = vstv %s1583_s15  ;;  %v905_v24 = vstv %s1585_s10  ;;  %s1606_s15 = sld [smem:[#allocation7 + $0x5]]  ;;  %s2079_s10 = smov 48  }
  0x78   : > { %v558_v46 = vadd.f32 %v557_v44, %v555_v43  ;;  %v726_v60 = vadd.f32 %v725_v58, %v721_v57  ;;  %v897_v22 = vadd.f32 %v896_v17, %v892_v16  ;;  %v901_v23 = vmul.f32 %v2316_v10, %v900_v18  ;;  %p2536_p0 = scmp.ne.s32.totalorder %s2525_s13, 0 }
  0x79   : > { %1671 = vmatmul.mubr.msk.f32.vlgmr.msra.gmra.mrb[0].mxu0 %vm381_vm1, %v374_v25  ;;  %v906_v26 = vmul.f32 %v2321_v15, %v905_v24  ;;  %v1067_v37 = vstv %s1589_s20  ;;  %v1071_v38 = vstv %s1591_s29  ;;  %s1610_s20 = sshll.u32 %s2059_s27, 7  ;;  %s1432_s29 = sshll.u32 %s2374_s22, 4  ;;  %s2455_s29 = int_to_ptr.vmem [resolvable:$true] %s1432_s29 }
  0x7a   : > { %1695 = vmatprep.mubr.msk.f32.mxu0 %vm2075_vm0, %v2076_v6  ;;  %1787 = vmatpush3.bf16.msra.mxu0 %v2336_v28  ;;  %v559_v47 = vmax.f32 %v558_v46, 0.0  ;;  %v731_v1 = vadd.f32 %v730_v61, %v726_v60  ;;  %v902_v25 = vadd.f32 %v901_v23, %v897_v22  ;;  %v1081_v48 = vstv %s1595_s8  ;;  %s2082_s27 = smov [#allocation9]  }
  0x7b   : > { %1788 = vmatprep.subr.bf16.mxu0 %v2074_v3  ;;  %v1082_v50 = vmul.f32 %v2321_v15, %v1081_v48  ;;  %v1243_v61 = vstv %s1599_s2  ;;  %s1977_s2 = scalar_lea.vmem %s2455_s29, 128 }
  0x7c   : > { %v734_v11 = vadd.f32 %v733_v2, %v731_v1  ;;  %v907_v31 = vadd.f32 %v906_v26, %v902_v25  ;;  %v1252_v1 = vstv %s1603_s12  ;;  %v1257_v13 = vstv %s1605_s23  ;;  %p1978_p5 = scmp.ne.s32.totalorder %s2455_s29, %s1977_s2 }
  0x7d   : > { %v1258_v16 = vmul.f32 %v2321_v15, %v1257_v13 }
  0x7e   : > { %v735_v12 = vmax.f32 %v734_v11, 0.0  ;;  %v910_v34 = vadd.f32 %v909_v32, %v907_v31  ;;  %p1979_p1 = pnand %p1978_p5, %p2536_p0 }
  0x80   : > { %v911_v35 = vmax.f32 %v910_v34, 0.0  ;;  %p1980_p6 = pneg %p1979_p1 }
 0x14c   : > { %v451_v40 = vpop.f32.mrb[0].mxu0 }
 0x14d   : > { %v452_v41 = vadd.f32 %v2349_v39, %v451_v40  ;;  %v1672_v42 = vpop.f32.mrb[1].mxu0  ;;  %v1068_v40 = vmul.f32 %v1067_v37, %v2310_v8 }
 0x14e   : > { %v1076_v42 = vstv %s1593_s30 }
 0x14f   : > { %v455_v45 = vmax.f32 %v452_v41, 0.0  ;;  %v1072_v41 = vmul.f32 %v2313_v9, %v1071_v38 }
 0x151   : > { %1678 = vmatmul.mubr.msk.f32.vlgmr.msra.gmra.mrb[0].mxu1 %vm462_vm2, %v455_v45  ;;  %v1073_v46 = vadd.f32 %v1072_v41, %v1068_v40 }
 0x152   : > { %1781 = vmatpush3.bf16.msra.mxu1 %v2295_v4  ;;  %1688 = vmatprep.mubr.msk.f32.mxu1 %vm2075_vm0, %v2076_v6 }
 0x153   : > { %1782 = vmatprep.subr.bf16.mxu1 %v2074_v3 }
 0x156   : > { %1784 = vmatpush3.bf16.msra.mxu1 %v2306_v7 }
 0x157   : > { %1794 = vmatprep.subr.bf16.mxu1 %v2074_v3 }
 0x159   : > { %1689 = vmatmul.mubr.msk.f32.vlgmr.msra.gmra.mrb[2].mxu1 %vm381_vm1, %v559_v47  ;;  %v1077_v47 = vmul.f32 %v2316_v10, %v1076_v42 }
 0x15a   : > { %1796 = vmatpush3.bf16.msra.mxu1 %v2336_v28  ;;  %1713 = vmatprep.mubr.msk.f32.mxu1 %vm2075_vm0, %v2076_v6 }
 0x15b   : > { %1797 = vmatprep.subr.bf16.mxu1 %v2074_v3  ;;  %v1078_v49 = vadd.f32 %v1077_v47, %v1073_v46 }
 0x224   : > { %v532_v54 = vpop.f32.mrb[0].mxu1 }
 0x225   : > { %v533_v55 = vadd.f32 %v2370_v52, %v532_v54  ;;  %v1679_v56 = vpop.f32.mrb[1].mxu1 }
 0x226   : > { %v1085_v56 = vstv %s1596_s11  ;;  %s2453_s11 = scalar_lea.hbm %s2510_s7, %s1610_s20 }
 0x227   : > { %536 = vst.msk [vmem:[%s2374_s22] sm:$0xff] %vm462_vm2, %v533_v55  ;;  %v1083_v55 = vadd.f32 %v1082_v50, %v1078_v49 }
 0x229   : > { %v1086_v58 = vadd.f32 %v1085_v56, %v1083_v55 }
 0x22b   : > { %v1087_v59 = vmax.f32 %v1086_v58, 0.0 }
 0x22c   : > { %v629_v62 = vpop.f32.mrb[2].mxu1 }
 0x22d   : > { %v630_v63 = vadd.f32 %v2349_v39, %v629_v62  ;;  %v1690_v0 = vpop.f32.mrb[3].mxu1  ;;  %v1247_v62 = vstv %s1601_s18  ;;  %s1981_s18 = sshll.u32 %s2082_s27, 4  ;;  %s1982_s18 = int_to_ptr.vmem [resolvable:$false] %s1981_s18 }
 0x22e   : > { %v1248_v0 = vmul.f32 %v2313_v9, %v1247_v62  ;;  %s1983_s12 = scalar_lea.vmem %s1982_s18, 256  ;;  %p1984_p11 = scmp.lt.s32.totalorder %s2455_s29, %s1982_s18 }
 0x22f   : > { %v633_v5 = vmax.f32 %v630_v63, 0.0  ;;  %v1244_v63 = vmul.f32 %v1243_v61, %v2310_v8  ;;  %p1985_p7 = scmp.lt.s32.totalorder %s1983_s12, %s1977_s2 }
 0x231   : > { %1696 = vmatmul.mubr.msk.f32.vlgmr.msra.gmra.mrb[2].mxu0 %vm462_vm2, %v633_v5  ;;  %v1249_v11 = vadd.f32 %v1248_v0, %v1244_v63  ;;  %p1986_p3 = por %p1985_p7, %p1984_p11 }
 0x232   : > { %1790 = vmatpush3.bf16.msra.mxu0 %v2295_v4  ;;  %1706 = vmatprep.mubr.msk.f32.mxu0 %vm2075_vm0, %v2076_v6 }
 0x233   : > { %1791 = vmatprep.subr.bf16.mxu0 %v2074_v3  ;;  %p1987_p8 = pnand %p1986_p3, %p1980_p6 }
 0x236   : > { %1793 = vmatpush3.bf16.msra.mxu0 %v2306_v7 }
 0x237   : > { %1803 = vmatprep.subr.bf16.mxu0 %v2074_v3 }
 0x239   : > { %1707 = vmatmul.mubr.msk.f32.vlgmr.msra.gmra.mrb[4].mxu0 %vm381_vm1, %v735_v12  ;;  %v1253_v12 = vmul.f32 %v2316_v10, %v1252_v1 }
 0x23a   : > { %1805 = vmatpush3.bf16.msra.mxu0 %v2336_v28  ;;  %1731 = vmatprep.mubr.msk.f32.mxu0 %vm2075_vm0, %v2076_v6 }
 0x23b   : > { %1806 = vmatprep.subr.bf16.mxu0 %v2074_v3  ;;  %v1254_v14 = vadd.f32 %v1253_v12, %v1249_v11 }
 0x23d   : > { %v1259_v18 = vadd.f32 %v1258_v16, %v1254_v14 }
 0x304   : > { %v703_v19 = vpop.f32.mrb[2].mxu0 }
 0x305   : > { %v704_v20 = vadd.f32 %v2370_v52, %v703_v19  ;;  %v1697_v21 = vpop.f32.mrb[3].mxu0  ;;  %v1261_v19 = vstv %s1606_s15 }
 0x306   : > { %v1262_v21 = vadd.f32 %v1261_v19, %v1259_v18 }
 0x307   : > { %708 = vrot.lane.b32.xlu0 %v704_v20, %s2077_s21  ;;  %s2081_s21 = smov 80  }
 0x308   : > { %v1263_v10 = vmax.f32 %v1262_v21, 0.0 }
 0x30c   : > { %v805_v27 = vpop.f32.mrb[4].mxu0 }
 0x30d   : > { %v806_v29 = vadd.f32 %v2349_v39, %v805_v27  ;;  %v1708_v30 = vpop.f32.mrb[5].mxu0 }
 0x30f   : > { %v809_v33 = vmax.f32 %v806_v29, 0.0 }
 0x311   : > { %1714 = vmatmul.mubr.msk.f32.vlgmr.msra.gmra.mrb[4].mxu1 %vm462_vm2, %v809_v33 }
 0x312   : > { %1799 = vmatpush3.bf16.msra.mxu1 %v2295_v4  ;;  %1724 = vmatprep.mubr.msk.f32.mxu1 %vm2075_vm0, %v2076_v6 }
 0x313   : > { %1800 = vmatprep.subr.bf16.mxu1 %v2074_v3 }
 0x316   : > { %1802 = vmatpush3.bf16.msra.mxu1 %v2306_v7 }
 0x317   : > { %1812 = vmatprep.subr.bf16.mxu1 %v2074_v3 }
 0x319   : > { %1725 = vmatmul.mubr.msk.f32.vlgmr.msra.gmra.mrb[6].mxu1 %vm381_vm1, %v911_v35 }
 0x31a   : > { %1814 = vmatpush3.bf16.msra.mxu1 %v2336_v28  ;;  %1749 = vmatprep.mubr.msk.f32.mxu1 %vm2075_vm0, %v2076_v6 }
 0x31b   : > { %1815 = vmatprep.subr.bf16.mxu1 %v2074_v3 }
 0x379   : > { %v709_v36 = vpop.permute.xlu0 %708 }
 0x37a   : > { %712 = vst.msk [vmem:[%s2374_s22] sm:$0xff] %vm711_vm3, %v709_v36 }
 0x3e4   : > { %v879_v43 = vpop.f32.mrb[4].mxu1 }
 0x3e5   : > { %v880_v44 = vadd.f32 %v2370_v52, %v879_v43  ;;  %v1715_v45 = vpop.f32.mrb[5].mxu1 }
 0x3e7   : > { %884 = vrot.lane.b32.xlu0 %v880_v44, %s2078_s9  ;;  %s1418_s9 = scalar_lea.sflag [#allocation4], %s2267_s19 }
 0x3ec   : > { %v981_v51 = vpop.f32.mrb[6].mxu1 }
 0x3ed   : > { %v982_v53 = vadd.f32 %v2349_v39, %v981_v51  ;;  %v1726_v54 = vpop.f32.mrb[7].mxu1 }
 0x3ef   : > { %v985_v57 = vmax.f32 %v982_v53, 0.0 }
 0x3f1   : > { %1732 = vmatmul.mubr.msk.f32.vlgmr.msra.gmra.mrb[6].mxu0 %vm462_vm2, %v985_v57 }
 0x3f2   : > { %1808 = vmatpush3.bf16.msra.mxu0 %v2295_v4  ;;  %1742 = vmatprep.mubr.msk.f32.mxu0 %vm2075_vm0, %v2076_v6 }
 0x3f3   : > { %1809 = vmatprep.subr.bf16.mxu0 %v2074_v3 }
 0x3f6   : > { %1811 = vmatpush3.bf16.msra.mxu0 %v2306_v7 }
 0x3f7   : > { %1821 = vmatprep.subr.bf16.mxu0 %v2074_v3 }
 0x3f9   : > { %1743 = vmatmul.mubr.msk.f32.vlgmr.msra.gmra.mrb[8].mxu0 %vm381_vm1, %v1087_v59 }
 0x3fa   : > { %1823 = vmatpush3.bf16.msra.mxu0 %v2336_v28  ;;  %1767 = vmatprep.mubr.msk.f32.mxu0 %vm2075_vm0, %v2076_v6 }
 0x459   : > { %v885_v60 = vpop.permute.xlu0 %884 }
 0x45a   : > { %888 = vst.msk [vmem:[%s2374_s22] sm:$0xff] %vm887_vm4, %v885_v60 }
 0x4c4   : > { %v1055_v2 = vpop.f32.mrb[6].mxu0 }
 0x4c5   : > { %v1056_v28 = vadd.f32 %v2370_v52, %v1055_v2  ;;  %v1733_v5 = vpop.f32.mrb[7].mxu0 }
 0x4c7   : > { %1060 = vrot.lane.b32.xlu1 %v1056_v28, %s2079_s10 }
 0x4cc   : > { %v1157_v17 = vpop.f32.mrb[8].mxu0 }
 0x4cd   : > { %v1158_v8 = vadd.f32 %v2349_v39, %v1157_v17  ;;  %v1744_v9 = vpop.f32.mrb[9].mxu0 }
 0x4cf   : > { %v1161_v20 = vmax.f32 %v1158_v8, 0.0 }
 0x4d1   : > { %1750 = vmatmul.mubr.msk.f32.vlgmr.msra.gmra.mrb[8].mxu1 %vm462_vm2, %v1161_v20 }
 0x4d2   : > { %1817 = vmatpush3.bf16.msra.mxu1 %v2295_v4  ;;  %1760 = vmatprep.mubr.msk.f32.mxu1 %vm2075_vm0, %v2076_v6 }
 0x4d3   : > { %1818 = vmatprep.subr.bf16.mxu1 %v2074_v3 }
 0x4d6   : > { %1820 = vmatpush3.bf16.msra.mxu1 %v2306_v7 }
 0x4d9   : > { %1761 = vmatmul.mubr.msk.f32.vlgmr.msra.gmra.mrb[10].mxu1 %vm381_vm1, %v1263_v10 }
 0x539   : > { %v1061_v15 = vpop.permute.xlu1 %1060 }
 0x53a   : > { %1064 = vst.msk [vmem:[%s2374_s22] sm:$0xff] %vm1063_vm5, %v1061_v15 }
 0x5a4   : > { %v1231_v22 = vpop.f32.mrb[8].mxu1 }
 0x5a5   : > { %v1232_v23 = vadd.f32 %v2370_v52, %v1231_v22  ;;  %v1751_v24 = vpop.f32.mrb[9].mxu1 }
 0x5a7   : > { %1236 = vrot.lane.b32.xlu1 %v1232_v23, %s2080_s17 }
 0x5ac   : > { %v1333_v4 = vpop.f32.mrb[10].mxu1 }
 0x5ad   : > { %v1334_v3 = vadd.f32 %v2349_v39, %v1333_v4  ;;  %v1762_v6 = vpop.f32.mrb[11].mxu1 }
 0x5af   : > { %v1337_v25 = vmax.f32 %v1334_v3, 0.0 }
 0x5b1   : > { %1768 = vmatmul.mubr.msk.f32.vlgmr.msra.gmra.mrb[10].mxu0 %vm462_vm2, %v1337_v25 }
 0x619   : > { %v1237_v7 = vpop.permute.xlu1 %1236 }
 0x61a   : > { %1240 = vst.msk [vmem:[%s2374_s22] sm:$0xff] %vm1239_vm6, %v1237_v7 }
 0x684   : > { %v1407_v26 = vpop.f32.mrb[10].mxu0 }
 0x685   : > { %v1408_v27 = vadd.f32 %v2370_v52, %v1407_v26  ;;  %v1769_v29 = vpop.f32.mrb[11].mxu0 }
 0x687   : > { %1412 = vrot.lane.b32.xlu0 %v1408_v27, %s2081_s21 }
 0x6f9   : > { %v1413_v39 = vpop.permute.xlu0 %1412 }
 0x6fa   : > { %1416 = vst.msk [vmem:[%s2374_s22] sm:$0xff] %vm1415_vm7, %v1413_v39 }
 0x6fb   : > { %1990 = shalt.err (!%p1987_p8)
}
 0x6fc   : > { %s1991_s19 = scalar_lea.hbm %s2453_s11, 128  ;;  %s1995_s15 = scalar_lea.hbm %s2510_s7, 256 }
 0x6fd   : > { %p1992_p13 = scmp.ne.s32.totalorder %s2453_s11, %s1991_s19  ;;  %p1996_p12 = scmp.lt.u32.totalorder %s2453_s11, %s2510_s7 }
 0x6fe   : > { %p1997_p2 = scmp.lt.u32.totalorder %s1995_s15, %s1991_s19  ;;  %p1999_p5 = scmp.lt.u32.totalorder %s1991_s19, %s2453_s11 }
 0x6ff   : > { %p1993_p4 = pnand %p1992_p13, %p2536_p0 }
 0x700   : > { %p1998_p9 = por %p1997_p2, %p1996_p12 }
 0x701   : > { %p1994_p10 = pneg %p1993_p4 }
 0x702   : > { %p2000_p1 = por %p1999_p5, %p1998_p9 }
 0x704   : > { %p2001_p6 = pnand %p2000_p1, %p1994_p10 }
 0x706   : > { %2004 = shalt.err (!%p2001_p6)
}
 0x707   : > { %1834 = dma.vmem_to_hbm [thread:$0]  (%p2536_p0), %s2455_s29, 128, %s2453_s11, %s1418_s9  }
 0x708 PF: > { %s2537_s21 = sld [smem:[#allocation14_spill]]  ;;  %s1444_s20 = sand.u32 1, %s2047_s24  }
 0x709   : > { %p2538_p11 = scmp.ne.s32.totalorder %s2526_s14, 0  ;;  %s1445_s30 = scalar_lea.sflag [#allocation4], %s1444_s20 }
 0x70e   : > { %p2539_p7 = scmp.ge.s32.totalorder %s2537_s21, 2 }
 0x710   : > { %p1848_p3 = pnand %p2539_p7, %p2538_p11 }
 0x712   : > { %2042 = dma.done.wait (!%p1848_p3), %s1445_s30, 128  }
 0x713   : > { %2044 = vsyncadd (!%p1848_p3), %s1445_s30, 4294967168  ;;  %s25_s29 = sadd.s32 1, %s2537_s21   ;;  %s2540_s24 = smov %s2051_s25 }
 0x714   : > { %p22_p8 = scmp.ge.s32.totalorder %s25_s29, 4   ;;  %s2541_s25 = smov %s2055_s26 }
 0x715   : > { %s2542_s26 = smov %s2234_s1  ;;  %s2543_s27 = smov %s2063_s28 }
 0x716   : > { %s2544_s28 = smov %s2546_s16  ;;  %24 = sbr.rel (!%p22_p8) target bundleno = 11 (0xb), region = 105 }
 0x71d   :  { %1450 = vsyncpa [#allocation3], 1 }
 0x71e   :  { %1452 = vsyncpa [#allocation3 + $0x1], 1 }
 0x71f   :  { %1453 = vsyncpa [#allocation4], 1 }
 0x720   :  { %1455 = vsyncpa [#allocation4 + $0x1], 1 }
 0x721   :  { %1456 = vsyncpa [#allocation5], 1 }
 0x722   :  { %1458 = vsyncpa [#allocation5 + $0x1], 1 }
 0x723   :  { %1459 = vsyncpa [#allocation8], 1 }

</bundles_post_ra>
